<compile_context>
chip_gen: v7x
topology: tpu7x:2x2x1
jax: 0.10.0
libtpu: 0.0.40
codegen_flags: <defaults>
</compile_context>

<pallas_src>
import functools
import math

import jax
import jax.numpy as jnp
from jax.experimental import pallas as pl
from jax.experimental.pallas import tpu as pltpu


def _round_up(v, m):
    return ((v + m - 1) // m) * m


# ----------------------------------------------------------------------------
# Pallas kernel: fused  W @ patches + bias  ->  GeneralRelu  -> + output_bias
# ----------------------------------------------------------------------------
def _conv_relu_kernel(ob_ref, p_ref, w_ref, b_ref, o_ref, *, leak, sub, maxv):
    # ob_ref: SMEM (1,) f32     -- LSUV-tuned output_bias (runtime scalar)
    # p_ref : (K, tM) bf16      -- im2col patches, K on sublanes, N*OH*OW on lanes
    # w_ref : (nf, K) bf16      -- conv weight reshaped
    # b_ref : (nf, 1) f32       -- conv bias
    # o_ref : (nf, tM)          -- lane-dense output tile
    acc = jnp.dot(w_ref[...], p_ref[...], preferred_element_type=jnp.float32)
    acc = acc + b_ref[...]                      # conv bias, broadcast over lanes

    # GeneralRelu: (leaky) relu -> subtract -> clamp-max -> + output_bias.
    # TODO(synk): ordering assumed from the standard fastai GeneralRelu; verify
    # whether torchrunner's LSUV variant applies output_bias pre-activation.
    if leak is None:
        acc = jnp.maximum(acc, 0.0)
    else:
        acc = jnp.where(acc >= 0.0, acc, acc * leak)
    if sub is not None:
        acc = acc - sub
    if maxv is not None:
        acc = jnp.minimum(acc, maxv)
    acc = acc + ob_ref[0]                       # LSUV output bias (runtime)

    o_ref[...] = acc.astype(o_ref.dtype)


def _vmem_capacity_bytes():
    """Per-generation VMEM capacity, with a conservative (v7x) fallback."""
    try:
        info = pltpu.get_tpu_info()
        cap = getattr(info, "vmem_capacity_bytes", None)
        if cap:
            return int(cap)
    except Exception:
        pass
    return 64 * 1024 * 1024


# ----------------------------------------------------------------------------
# Wrapper: the "module" forward pass
# ----------------------------------------------------------------------------
def lsuv_conv_layer(x, weight, bias, *, ks=3, stride=2,
                    leak=None, sub=None, maxv=None, output_bias=0.0,
                    tile_m=16384, compute_dtype=jnp.bfloat16,
                    out_dtype=jnp.bfloat16):
    """x: (N, ni, H, W) NCHW.  weight: (nf, ni, ks, ks).  bias: (nf,).

    Returns (N, nf, OH, OW) in `out_dtype` (use jnp.float32 for full width)."""
    n, ni, h, w = x.shape
    nf = weight.shape[0]
    k_dim = ni * ks * ks
    pad = ks // 2
    oh = (h + 2 * pad - ks) // stride + 1
    ow = (w + 2 * pad - ks) // stride + 1
    m_total = n * oh * ow

    # Patch extraction as a single fused XLA op, emitted in bf16 and in C-major
    # ("CNHW") layout: (K, N, OH, OW) -> (K, N*OH*OW) is a free reshape, so the
    # big flat axis lands on lanes with no extra transpose pass.  Channel
    # ordering of K is (c, kh, kw) == weight.reshape(nf, ni*ks*ks) flattening.
    patches = jax.lax.conv_general_dilated_patches(
        x.astype(compute_dtype), filter_shape=(ks, ks),
        window_strides=(stride, stride), padding=[(pad, pad), (pad, pad)],
        dimension_numbers=("NCHW", "OIHW", "CNHW"))
    patches = patches.reshape(k_dim, m_total)

    w_mat = weight.reshape(nf, k_dim).astype(compute_dtype)        # (nf, K)
    b2d = bias.astype(jnp.float32).reshape(nf, 1)                  # (nf, 1)
    ob = jnp.reshape(jnp.asarray(output_bias, dtype=jnp.float32), (1,))

    p_bytes = jnp.dtype(compute_dtype).itemsize
    o_bytes = jnp.dtype(out_dtype).itemsize

    # Lane-tile size from a per-generation VMEM budget: double-buffered
    # (patches tile + output tile) + resident weight/bias kept well under the
    # scoped limit.  v7x -> ~32 MiB limit / ~16 MiB tile budget; v5e/v6e -> 64/32.
    vmem_limit = min(_vmem_capacity_bytes() // 2, 64 * 1024 * 1024)
    tile_budget = vmem_limit // 2
    fixed = 2 * (nf * k_dim * p_bytes + nf * 4)           # weight + bias, dbl-buffered
    per_lane = 2 * (k_dim * p_bytes + nf * o_bytes)       # patches + out, dbl-buffered
    t_m_cap = max(128, (tile_budget - fixed) // per_lane)

    if m_total <= 128:
        t_m = m_total                      # block == full array dim is legal
    else:
        t_m = min(tile_m, t_m_cap, _round_up(m_total, 128))
        t_m = max(128, (t_m // 128) * 128)
        # v7x has 2 TensorCores: keep >= 2 steps on the "parallel" axis.
        if -(-m_total // t_m) < 2:
            t_m = max(128, _round_up(-(-m_total // 2), 128))
    grid = (pl.cdiv(m_total, t_m),)

    kernel = functools.partial(_conv_relu_kernel, leak=leak, sub=sub, maxv=maxv)

    cost = pl.CostEstimate(
        flops=int(2 * m_total * k_dim * nf),
        transcendentals=0,
        bytes_accessed=int(patches.size * p_bytes + w_mat.size * p_bytes
                           + b2d.size * 4 + nf * m_total * o_bytes),
    )

    out_flat = pl.pallas_call(
        kernel,
        out_shape=jax.ShapeDtypeStruct((nf, m_total), out_dtype),
        grid_spec=pltpu.PrefetchScalarGridSpec(
            num_scalar_prefetch=0,
            grid=grid,
            in_specs=[
                pl.BlockSpec(memory_space=pltpu.MemorySpace.SMEM),   # output_bias
                pl.BlockSpec((k_dim, t_m), lambda j: (0, j)),        # patches
                pl.BlockSpec((nf, k_dim), lambda j: (0, 0)),         # weight
                pl.BlockSpec((nf, 1), lambda j: (0, 0)),             # conv bias
            ],
            out_specs=pl.BlockSpec((nf, t_m), lambda j: (0, j)),
        ),
        compiler_params=pltpu.CompilerParams(
            dimension_semantics=("parallel",),
            vmem_limit_bytes=int(vmem_limit),
        ),
        cost_estimate=cost,
    )(ob, patches, w_mat, b2d)

    # (nf, N*OH*OW) -> (N, nf, OH, OW).  One small transpose of the (smaller)
    # output tensor; kernel-side stores stay lane-dense.
    return jnp.transpose(out_flat.reshape(nf, n, oh, ow), (1, 0, 2, 3))


# ----------------------------------------------------------------------------
# Pure-JAX reference (inputs rounded to the kernel's compute dtype)
# ----------------------------------------------------------------------------
def _reference(x, weight, bias, *, ks=3, stride=2,
               leak=None, sub=None, maxv=None, output_bias=0.0,
               compute_dtype=jnp.bfloat16):
    pad = ks // 2
    xr = x.astype(compute_dtype).astype(jnp.float32)
    wr = weight.astype(compute_dtype).astype(jnp.float32)
    y = jax.lax.conv_general_dilated(
        xr, wr, window_strides=(stride, stride),
        padding=[(pad, pad), (pad, pad)],
        dimension_numbers=("NCHW", "OIHW", "NCHW"),
        precision=jax.lax.Precision.HIGHEST,
    ) + bias.astype(jnp.float32).reshape(1, -1, 1, 1)
    if leak is None:
        y = jnp.maximum(y, 0.0)
    else:
        y = jnp.where(y >= 0.0, y, y * leak)
    if sub is not None:
        y = y - sub
    if maxv is not None:
        y = jnp.minimum(y, maxv)
    return y + output_bias


if __name__ == "__main__":
    # Module config: ni=4, nf=8, ks=3, stride=2.
    ni, nf, ks, stride = 4, 8, 3, 2
    output_bias = 0.1   # LSUV-tuned value, passed as a runtime scalar

    key = jax.random.PRNGKey(0)
    kx, kw, kb = jax.random.split(key, 3)

    # nn.Conv2d-style init: uniform +/- 1/sqrt(fan_in).
    fan_in = ni * ks * ks
    bound = 1.0 / math.sqrt(fan_in)
    weight = jax.random.uniform(kw, (nf, ni, ks, ks), jnp.float32, -bound, bound)
    bias = jax.random.uniform(kb, (nf,), jnp.float32, -bound, bound)

    # Input: (N, C, H, W) = (2, 4, 16, 16)  ->  output (2, 8, 8, 8)
    x = jax.random.normal(kx, (2, ni, 16, 16), jnp.float32)

    # Plain ReLU path.
    out = lsuv_conv_layer(x, weight, bias, ks=ks, stride=stride,
                          output_bias=output_bias)
    out = jax.block_until_ready(out)
    ref = _reference(x, weight, bias, ks=ks, stride=stride,
                     output_bias=output_bias)
    assert out.shape == (2, nf, 8, 8), out.shape
    err = float(jnp.max(jnp.abs(out.astype(jnp.float32) - ref)))
    assert err < 2e-2, err

    # GeneralRelu with leak / sub / maxv (exercise the other branches).
    out2 = lsuv_conv_layer(x, weight, bias, ks=ks, stride=stride,
                           leak=0.1, sub=0.2, maxv=3.0, output_bias=output_bias)
    out2 = jax.block_until_ready(out2)
    ref2 = _reference(x, weight, bias, ks=ks, stride=stride,
                      leak=0.1, sub=0.2, maxv=3.0, output_bias=output_bias)
    err2 = float(jnp.max(jnp.abs(out2.astype(jnp.float32) - ref2)))
    assert err2 < 2e-2, err2

    print("KERNEL_OK")
</pallas_src>

<mosaic_0001>
module attributes {stable_mosaic.version = 11 : i64} {
  func.func @_conv_relu_kernel(%arg0: i32, %arg1: memref<1xf32, #tpu.memory_space<smem>>, %arg2: memref<36x128xbf16, #tpu.memory_space<vmem>>, %arg3: memref<8x36xbf16, #tpu.memory_space<vmem>>, %arg4: memref<8x1xf32, #tpu.memory_space<vmem>>, %arg5: memref<8x128xbf16, #tpu.memory_space<vmem>>) attributes {dimension_semantics = [#tpu.dimension_semantics<parallel>], iteration_bounds = array<i64: 1>, scalar_prefetch = 0 : i64, scratch_operands = 0 : i64, tpu.core_type = #tpu.core_type<tc>, window_params = [{transform_indices = @transform_0, window_bounds = array<i64: 1>}, {transform_indices = @transform_1, window_bounds = array<i64: 36, 128>}, {pipeline_mode = #tpu.pipeline_mode<synchronous>, transform_indices = @transform_2, window_bounds = array<i64: 8, 36>}, {pipeline_mode = #tpu.pipeline_mode<synchronous>, transform_indices = @transform_3, window_bounds = array<i64: 8, 1>}, {transform_indices = @transform_4, window_bounds = array<i64: 8, 128>}]} {
    %c0 = arith.constant 0 : index
    %c0_0 = arith.constant 0 : index
    %0 = vector.load %arg3[%c0, %c0_0] : memref<8x36xbf16, #tpu.memory_space<vmem>>, vector<8x36xbf16>
    %c0_1 = arith.constant 0 : index
    %c0_2 = arith.constant 0 : index
    %1 = vector.load %arg2[%c0_1, %c0_2] : memref<36x128xbf16, #tpu.memory_space<vmem>>, vector<36x128xbf16>
    %cst = arith.constant dense<0.000000e+00> : vector<8x128xf32>
    %2 = tpu.matmul %0, %1, %cst {dimension_numbers = #tpu.dot_dimension_numbers<[1], [0], [0], [1], [0, 0, 1, 1], [], []>} : vector<8x36xbf16>, vector<36x128xbf16>, vector<8x128xf32> -> vector<8x128xf32>
    %c0_3 = arith.constant 0 : index
    %c0_4 = arith.constant 0 : index
    %3 = vector.load %arg4[%c0_3, %c0_4] : memref<8x1xf32, #tpu.memory_space<vmem>>, vector<8x1xf32>
    %4 = vector.broadcast %3 : vector<8x1xf32> to vector<8x128xf32>
    %5 = arith.addf %2, %4 : vector<8x128xf32>
    %cst_5 = arith.constant 0.000000e+00 : f32
    %6 = vector.broadcast %cst_5 : f32 to vector<8x128xf32>
    %7 = arith.maximumf %5, %6 : vector<8x128xf32>
    %c0_6 = arith.constant 0 : index
    %8 = memref.load %arg1[%c0_6] : memref<1xf32, #tpu.memory_space<smem>>
    %9 = vector.broadcast %8 : f32 to vector<8x128xf32>
    %10 = arith.addf %7, %9 : vector<8x128xf32>
    %11 = arith.truncf %10 : vector<8x128xf32> to vector<8x128xbf16>
    %c0_7 = arith.constant 0 : index
    %c0_8 = arith.constant 0 : index
    %12 = vector.load %arg5[%c0_7, %c0_8] : memref<8x128xbf16, #tpu.memory_space<vmem>>, vector<8x128xbf16>
    tpu.vector_store %arg5[%c0_7, %c0_8], %11 {strides = array<i32>} : memref<8x128xbf16, #tpu.memory_space<vmem>>, vector<8x128xbf16>,
    return
  }
  func.func @transform_0(%arg0: i32) -> i32 {
    %c0_i32 = arith.constant 0 : i32
    %c0_i32_0 = arith.constant 0 : i32
    return %c0_i32 : i32
  }
  func.func @transform_1(%arg0: i32) -> (i32, i32) {
    %c0_i32 = arith.constant 0 : i32
    %c0_i32_0 = arith.constant 0 : i32
    return %c0_i32, %arg0 : i32, i32
  }
  func.func @transform_2(%arg0: i32) -> (i32, i32) {
    %c0_i32 = arith.constant 0 : i32
    %c0_i32_0 = arith.constant 0 : i32
    %c0_i32_1 = arith.constant 0 : i32
    return %c0_i32, %c0_i32_0 : i32, i32
  }
  func.func @transform_3(%arg0: i32) -> (i32, i32) {
    %c0_i32 = arith.constant 0 : i32
    %c0_i32_0 = arith.constant 0 : i32
    %c0_i32_1 = arith.constant 0 : i32
    return %c0_i32, %c0_i32_0 : i32, i32
  }
  func.func @transform_4(%arg0: i32) -> (i32, i32) {
    %c0_i32 = arith.constant 0 : i32
    %c0_i32_0 = arith.constant 0 : i32
    return %c0_i32, %arg0 : i32, i32
  }
}

</mosaic_0001>

<bundles_post_ra>
// kernel: tpu_custom_call.1
= control target key start
LH: loop header
LB: loop body
LE: loop exit
PB: predicated region body
PF: predicated region fallthrough
CT: control target
= control target key end

     0   :  { %10 = vsyncpa [#allocation4], 0  ;;  %s272_s0 = inlined_call_operand.<no memory space> [shape: f32[1], index: 0, kind: input, shape index: {}]   ;;  %s273_s1 = inlined_call_operand.hbm [shape: bf16[36,128], index: 1, kind: input, shape index: {}]   ;;  %s274_s2 = inlined_call_operand.vmem [shape: bf16[8,36], index: 2, kind: input, shape index: {}]   ;;  %s275_s3 = inlined_call_operand.vmem [shape: f32[8,1], index: 3, kind: input, shape index: {}]   ;;  %s276_s4 = inlined_call_operand.hbm [shape: bf16[8,128], index: 4, kind: output, shape index: {}]  }
   0x1   :  { %11 = vsyncpa [#allocation5], 0  ;;  %s207_s15 = smov [#allocation3]   ;;  %s159_s19 = scalar_lea.hbm %s273_s1, 320 }
   0x2   :  { %s19_s16 = sshll.u32 %s207_s15, 4  ;;  %p160_p0 = scmp.ne.s32.totalorder %s273_s1, %s159_s19  ;;  %s20_s16 = int_to_ptr.vmem [resolvable:$true] %s19_s16 }
   0x3   :  { %p163_p1 = scmp.lt.u32.totalorder %s159_s19, %s273_s1 }
   0x5   :  { %p165_p2 = pnand %p163_p1, %p160_p0 }
   0x7   :  { %168 = shalt.err (!%p165_p2)
}
   0x8   :  { %s169_s24 = scalar_lea.vmem %s20_s16, 320  ;;  %p174_p4 = scmp.lt.s32.totalorder %s20_s16, %s20_s16 }
   0x9   :  { %p170_p3 = scmp.ne.s32.totalorder %s20_s16, %s169_s24  ;;  %p175_p5 = scmp.lt.s32.totalorder %s169_s24, %s169_s24 }
   0xb   :  { %p176_p6 = por %p175_p5, %p174_p4 }
   0xd   :  { %p177_p7 = pnand %p176_p6, %p170_p3 }
   0xf   :  { %180 = shalt.err (!%p177_p7)
}
  0x10   :  { %s208_s25 = smov 64   ;;  %s209_s26 = smov 4  }
  0x11   :  { %25 = dma.hbm_to_vmem [thread:$0]  %s273_s1, 320, %s20_s16, [#allocation4], %s208_s25, %s208_s25, %s209_s26  }
  0x12   :  { %203 = dma.done.wait [#allocation4], 320  }
  0x13   :  { %204 = vsyncadd [#allocation4], 4294966976  ;;  %v210_v0 = vmov 0.0   ;;  %vm211_vm0 = vmmov 0   ;;  %v212_v1 = vmov 0   ;;  %v156_v2 = vld [vmem:[#allocation3] sm:$0xff]   ;;  %v111_v12 = vstv %s272_s0 }
  0x14   :  { %138 = vmatprep.subr.bf16.mxu0 %v210_v0  ;;  %144 = vmatprep.mubr.msk.bf16.mxu0 %vm211_vm0, %v210_v0  ;;  %v157_v3 = vld [vmem:[#allocation3 + $0x8] sm:$0xff]   ;;  %v40_v4 = vld [vmem:[%s275_s3] sm:$0xff]  ;;  %v158_v5 = vld [vmem:[#allocation3 + $0x10] ss:$0 sps:$4 sm:$0x33]   ;;  %vm65_vm1 = vcmask 1041408  }
  0x15   :  { %155 = vset.pattern.permute.xlu0 %v212_v1  ;;  %139 = vmatpush3.bf16.msra.mxu0 %v156_v2  ;;  %v67_v6 = vsel %vm65_vm1, %v158_v5, 0  ;;  %v34_v7 = vld [vmem:[%s274_s2] sm:$0xf]  ;;  %vm61_vm2 = vcmask 293888   ;;  %s213_s7 = smov [#allocation6]  }
  0x16   :  { %140 = vmatprep.subr.bf16.mxu0 %v210_v0  ;;  %43 = vperm.xlu0 %155, %v40_v4   ;;  %s121_s8 = sshll.u32 %s213_s7, 4  ;;  %s122_s8 = int_to_ptr.vmem [resolvable:$true] %s121_s8 }
  0x17   :  { %s181_s2 = scalar_lea.vmem %s122_s8, 64  ;;  %p186_p9 = scmp.lt.s32.totalorder %s122_s8, %s122_s8 }
  0x18   :  { %p182_p8 = scmp.ne.s32.totalorder %s122_s8, %s181_s2  ;;  %p187_p10 = scmp.lt.s32.totalorder %s181_s2, %s181_s2 }
  0x19   :  { %141 = vmatpush3.bf16.msra.mxu0 %v157_v3 }
  0x1a   :  { %142 = vmatprep.subr.bf16.mxu0 %v210_v0  ;;  %p188_p11 = por %p187_p10, %p186_p9 }
  0x1c   :  { %p189_p12 = pnand %p188_p11, %p182_p8 }
  0x1d   :  { %143 = vmatpush3.bf16.msra.mxu0 %v67_v6 }
  0x20   :  { %145 = vmatmul.mubr.msk.bf16.vlgmr.msra.gmra.mrb[0].mxu0 %vm61_vm2, %v34_v7 }
  0x95   :  { %v44_v8 = vpop.permute.xlu0 %43 }
  0xf3   :  { %v103_v9 = vpop.f32.mrb[0].mxu0 }
  0xf4   :  { %v104_v10 = vadd.f32 %v103_v9, %v44_v8  ;;  %v146_v11 = vpop.f32.mrb[1].mxu0 }
  0xf5   :  { %v106_v13 = vpop.f32.mrb[2].mxu0 }
  0xf6   :  { %v109_v14 = vmax.f32 %v104_v10, 0.0  ;;  %v147_v15 = vpop.f32.mrb[3].mxu0 }
  0xf8   :  { %v112_v16 = vadd.f32 %v111_v12, %v109_v14 }
  0xfa   :  { %v113_v17 = vpack.c.bf16 %v112_v16, %v112_v16 }
  0xfc   :  { %114 = vst [vmem:[#allocation6] sm:$0xf] %v113_v17 }
  0xfd   :  { %192 = shalt.err (!%p189_p12)
}
  0xfe   :  { %s193_s0 = scalar_lea.hbm %s276_s4, 64 }
  0xff   :  { %p194_p13 = scmp.ne.s32.totalorder %s276_s4, %s193_s0  ;;  %p197_p0 = scmp.lt.u32.totalorder %s193_s0, %s276_s4 }
 0x101   :  { %p199_p1 = pnand %p197_p0, %p194_p13 }
 0x103   :  { %202 = shalt.err (!%p199_p1)
}
 0x104   :  { %124 = dma.vmem_to_hbm [thread:$0]  %s122_s8, 64, %s276_s4, [#allocation5]  }
 0x105   :  { %205 = dma.done.wait [#allocation5], 64  }
 0x106   :  { %206 = vsyncadd [#allocation5], 4294967232 }
 0x107   :  { %128 = vsyncpa [#allocation4], 1 }
 0x108   :  { %129 = vsyncpa [#allocation5], 1 }

</bundles_post_ra>
